<compile_context>
chip_gen: v7x
topology: tpu7x:2x2x1
jax: 0.10.0
libtpu: 0.0.40
codegen_flags: <defaults>
</compile_context>

<pallas_src>
import functools

import jax
import jax.numpy as jnp
from jax.experimental import pallas as pl
from jax.experimental.pallas import tpu as pltpu

BN_EPS = 1e-5
LANE = 128
SUB = 8


def _rup(x, m):
    return ((x + m - 1) // m) * m


# ----------------------------------------------------------------------------
# Kernel
# ----------------------------------------------------------------------------
def _concate_fwd_kernel(meta_x_ref, img_feat_ref, p_ref, w_img_ref, out_ref, *, offs):
    f32 = jnp.float32

    def seg(name):
        lo, n = offs[name]
        return p_ref[lo:lo + n, :]          # static 8-row-aligned, 128-lane slice

    # ---- MetaSubNet MLP: Linear -> ReLU -> Linear(+folded BN) -> ReLU
    h1 = jnp.dot(meta_x_ref[...], seg("w1"), preferred_element_type=f32)
    h1 = jnp.maximum(h1 + seg("b1"), 0.0)                       # (B, 128), cols>=hid are 0
    h2 = jnp.dot(h1, seg("w2"), preferred_element_type=f32)
    meta_h = jnp.maximum(h2 + seg("b2"), 0.0)                   # (B, 128), cols>=out are 0

    # ---- Both ImgSubNet heads in one bf16 matmul (block-diagonal weight).
    #      Head biases are folded into the fused fc bias host-side.
    img_h = jnp.dot(img_feat_ref[...], w_img_ref[...], preferred_element_type=f32)

    # ---- Fused fc_6 | fc_2 head (split-weight form of the concat).
    diag = (jnp.dot(meta_h, seg("wfc_meta"), preferred_element_type=f32)
            + jnp.dot(img_h, seg("wfc_img"), preferred_element_type=f32)
            + seg("bfc"))
    out_ref[...] = diag.astype(out_ref.dtype)


# ----------------------------------------------------------------------------
# Host-side folding / packing
# ----------------------------------------------------------------------------
def _fold_and_pack(p, meta_in, meta_hidden, meta_out, fc_node,
                   cli_out, der_out, num_classes):
    f32 = jnp.float32
    nout = num_classes + 2
    img_out = cli_out + der_out
    meta_in_p = _rup(meta_in, SUB)
    assert meta_hidden <= LANE and meta_out <= LANE and nout <= LANE
    assert img_out % SUB == 0, "cli_out + der_out must be a multiple of 8"

    # Fold eval-mode BatchNorm1d into the second meta Linear.
    scale = p["bn_g"] / jnp.sqrt(p["bn_v"] + BN_EPS)             # (meta_out,)
    w2f = p["w2"] * scale[None, :]
    b2f = (p["b2"] - p["bn_m"]) * scale + p["bn_b"]

    # Fuse fc_6 / fc_2 into one head; split by concat segment [meta | cli+der].
    wfc = jnp.concatenate([p["w6"], p["w2c"]], axis=1)           # (D, nout)
    bfc = jnp.concatenate([p["b6"], p["b2c"]], axis=0)           # (nout,)
    wfc_meta = wfc[:meta_out]                                    # (meta_out, nout)
    wfc_img = wfc[meta_out:]                                     # (img_out, nout)
    img_b = jnp.concatenate([p["cli_b"], p["der_b"]], axis=0)    # (img_out,)
    bfc = bfc + img_b @ wfc_img                                  # fold image-head bias

    # f32 parameter slab: (rows, 128); each segment 8-row-aligned, zero-padded.
    # (name, allocated_rows, slice_rows_used_by_kernel_dot, value (r, c))
    segs = [
        ("w1",       meta_in_p,           meta_in_p, jnp.zeros((meta_in_p, meta_hidden), f32).at[:meta_in].set(p["w1"])),
        ("b1",       SUB,                 1,         p["b1"][None, :]),
        ("w2",       LANE,                LANE,      w2f),
        ("b2",       SUB,                 1,         b2f[None, :]),
        ("wfc_meta", LANE,                LANE,      wfc_meta),
        ("wfc_img",  _rup(img_out, SUB),  img_out,   wfc_img),
        ("bfc",      SUB,                 1,         bfc[None, :]),
    ]
    total_rows = sum(r for _, r, _, _ in segs)
    slab = jnp.zeros((total_rows, LANE), f32)
    offs = {}
    row = 0
    for name, rows, used, val in segs:
        vr, vc = val.shape
        slab = slab.at[row:row + vr, :vc].set(val.astype(f32))
        offs[name] = (row, used)
        row += rows

    # Block-diagonal image-head weight (fuses cli + der heads), bf16 for the MXU.
    w_img = jnp.zeros((2 * fc_node, img_out), f32)
    w_img = w_img.at[:fc_node, :cli_out].set(p["cli_w"])
    w_img = w_img.at[fc_node:, cli_out:].set(p["der_w"])
    w_img = w_img.astype(jnp.bfloat16)

    return slab, offs, w_img, meta_in_p


# ----------------------------------------------------------------------------
# Wrapper
# ----------------------------------------------------------------------------
def concate_model_forward(meta_x, cli_feat, der_feat, params, num_classes=6,
                          batch_tile=256):
    B, meta_in = meta_x.shape
    fc_node = cli_feat.shape[1]
    assert der_feat.shape[1] == fc_node
    meta_hidden = params["w1"].shape[1]
    meta_out = params["w2"].shape[1]
    cli_out = params["cli_w"].shape[1]
    der_out = params["der_w"].shape[1]
    img_out = cli_out + der_out
    nout = num_classes + 2

    slab, offs, w_img, meta_in_p = _fold_and_pack(
        params, meta_in, meta_hidden, meta_out, fc_node,
        cli_out, der_out, num_classes)

    # Batch padding / tiling: at least 8 sublanes, grid axis parallel over batch.
    tb = min(_rup(batch_tile, SUB), _rup(B, SUB))
    b_pad = _rup(B, tb)

    meta_xp = jnp.zeros((b_pad, meta_in_p), jnp.float32).at[:B, :meta_in].set(meta_x)
    img_feat = jnp.zeros((b_pad, 2 * fc_node), jnp.bfloat16)
    img_feat = img_feat.at[:B, :fc_node].set(cli_feat.astype(jnp.bfloat16))
    img_feat = img_feat.at[:B, fc_node:].set(der_feat.astype(jnp.bfloat16))

    flops = 2 * b_pad * (meta_in_p * LANE + LANE * LANE
                         + 2 * fc_node * img_out + LANE * LANE + img_out * LANE)
    bytes_accessed = (meta_xp.size * 4 + img_feat.size * 2
                      + slab.size * 4 + w_img.size * 2 + b_pad * LANE * 4)

    kernel = functools.partial(_concate_fwd_kernel, offs=offs)

    out = pl.pallas_call(
        kernel,
        out_shape=jax.ShapeDtypeStruct((b_pad, LANE), jnp.float32),
        grid=(b_pad // tb,),
        in_specs=[
            pl.BlockSpec((tb, meta_in_p), lambda i: (i, 0)),
            pl.BlockSpec((tb, 2 * fc_node), lambda i: (i, 0)),
            pl.BlockSpec(slab.shape, lambda i: (0, 0)),     # weights resident
            pl.BlockSpec(w_img.shape, lambda i: (0, 0)),    # weights resident
        ],
        out_specs=pl.BlockSpec((tb, LANE), lambda i: (i, 0)),
        compiler_params=pltpu.CompilerParams(
            dimension_semantics=("parallel",)),
        cost_estimate=pl.CostEstimate(flops=flops, transcendentals=0,
                                      bytes_accessed=bytes_accessed),
    )(meta_xp, img_feat, slab, w_img)

    return [out[:B, :num_classes], out[:B, num_classes:nout]]


# ----------------------------------------------------------------------------
# Parameters (PyTorch layout, pre-transposed to (in, out)) + pure-JAX reference
# ----------------------------------------------------------------------------
def _init_params(key, meta_in, meta_hidden, meta_out, fc_node,
                 cli_out, der_out, num_classes):
    ks = jax.random.split(key, 16)
    n = lambda k, shape, s=0.05: (s * jax.random.normal(k, shape)).astype(jnp.float32)
    D = meta_out + cli_out + der_out
    return {
        "w1": n(ks[0], (meta_in, meta_hidden)), "b1": n(ks[1], (meta_hidden,)),
        "w2": n(ks[2], (meta_hidden, meta_out)), "b2": n(ks[3], (meta_out,)),
        "bn_g": (1.0 + 0.1 * jax.random.normal(ks[4], (meta_out,))).astype(jnp.float32),
        "bn_b": (0.1 * jax.random.normal(ks[5], (meta_out,))).astype(jnp.float32),
        "bn_m": (0.1 * jax.random.normal(ks[6], (meta_out,))).astype(jnp.float32),
        "bn_v": (1.0 + 0.5 * jax.random.uniform(ks[7], (meta_out,))).astype(jnp.float32),
        "cli_w": n(ks[8], (fc_node, cli_out)), "cli_b": n(ks[9], (cli_out,)),
        "der_w": n(ks[10], (fc_node, der_out)), "der_b": n(ks[11], (der_out,)),
        "w6": n(ks[12], (D, num_classes)), "b6": n(ks[13], (num_classes,)),
        "w2c": n(ks[14], (D, 2)), "b2c": n(ks[15], (2,)),
    }


def _reference(meta_x, cli_feat, der_feat, p):
    f32, bf16 = jnp.float32, jnp.bfloat16
    h = jnp.maximum(meta_x @ p["w1"] + p["b1"], 0.0)
    m = h @ p["w2"] + p["b2"]
    m = (m - p["bn_m"]) / jnp.sqrt(p["bn_v"] + BN_EPS) * p["bn_g"] + p["bn_b"]
    meta_h = jnp.maximum(m, 0.0)
    # same bf16-input / f32-accumulate policy the kernel uses for the image heads
    cli_h = jnp.dot(cli_feat.astype(bf16), p["cli_w"].astype(bf16),
                    preferred_element_type=f32) + p["cli_b"]
    der_h = jnp.dot(der_feat.astype(bf16), p["der_w"].astype(bf16),
                    preferred_element_type=f32) + p["der_b"]
    x = jnp.concatenate([meta_h, cli_h, der_h], axis=-1)
    return x @ p["w6"] + p["b6"], x @ p["w2c"] + p["b2c"]


if __name__ == "__main__":
    B = 2
    meta_in, meta_hidden, meta_out = 16, 32, 32
    cli_out, der_out = 32, 32
    fc_node = 128          # backbone feature width (synthetic)
    num_classes = 6

    key = jax.random.PRNGKey(0)
    k_m, k_c, k_d, k_p = jax.random.split(key, 4)
    meta_x = jax.random.normal(k_m, (B, meta_in), jnp.float32)
    cli_feat = jax.random.normal(k_c, (B, fc_node), jnp.float32)   # backbone features
    der_feat = jax.random.normal(k_d, (B, fc_node), jnp.float32)   # backbone features

    params = _init_params(k_p, meta_in, meta_hidden, meta_out, fc_node,
                          cli_out, der_out, num_classes)

    diag6, diag2 = concate_model_forward(meta_x, cli_feat, der_feat, params,
                                         num_classes=num_classes)
    jax.block_until_ready(diag6)
    jax.block_until_ready(diag2)

    ref6, ref2 = _reference(meta_x, cli_feat, der_feat, params)
    assert diag6.shape == (B, num_classes) and diag2.shape == (B, 2)
    assert jnp.allclose(diag6, ref6, atol=1e-3, rtol=1e-3), "diag_6 mismatch"
    assert jnp.allclose(diag2, ref2, atol=1e-3, rtol=1e-3), "diag_2 mismatch"

    print("KERNEL_OK")
</pallas_src>

<mosaic_0001>
module attributes {stable_mosaic.version = 11 : i64} {
  func.func @_concate_fwd_kernel(%arg0: i32, %arg1: memref<8x16xf32, #tpu.memory_space<vmem>>, %arg2: memref<8x256xbf16, #tpu.memory_space<vmem>>, %arg3: memref<360x128xf32, #tpu.memory_space<vmem>>, %arg4: memref<256x64xbf16, #tpu.memory_space<vmem>>, %arg5: memref<8x128xf32, #tpu.memory_space<vmem>>) attributes {dimension_semantics = [#tpu.dimension_semantics<parallel>], iteration_bounds = array<i64: 1>, scalar_prefetch = 0 : i64, scratch_operands = 0 : i64, tpu.core_type = #tpu.core_type<tc>, window_params = [{transform_indices = @transform_0, window_bounds = array<i64: 8, 16>}, {transform_indices = @transform_1, window_bounds = array<i64: 8, 256>}, {pipeline_mode = #tpu.pipeline_mode<synchronous>, transform_indices = @transform_2, window_bounds = array<i64: 360, 128>}, {pipeline_mode = #tpu.pipeline_mode<synchronous>, transform_indices = @transform_3, window_bounds = array<i64: 256, 64>}, {transform_indices = @transform_4, window_bounds = array<i64: 8, 128>}]} {
    %c0 = arith.constant 0 : index
    %c0_0 = arith.constant 0 : index
    %0 = vector.load %arg1[%c0, %c0_0] : memref<8x16xf32, #tpu.memory_space<vmem>>, vector<8x16xf32>
    %c0_1 = arith.constant 0 : index
    %c0_2 = arith.constant 0 : index
    %1 = vector.load %arg3[%c0_1, %c0_2] : memref<360x128xf32, #tpu.memory_space<vmem>>, vector<16x128xf32>
    %cst = arith.constant dense<0.000000e+00> : vector<8x128xf32>
    %2 = tpu.matmul %0, %1, %cst {dimension_numbers = #tpu.dot_dimension_numbers<[1], [0], [0], [1], [0, 0, 1, 1], [], []>} : vector<8x16xf32>, vector<16x128xf32>, vector<8x128xf32> -> vector<8x128xf32>
    %c16 = arith.constant 16 : index
    %c0_3 = arith.constant 0 : index
    %3 = vector.load %arg3[%c16, %c0_3] : memref<360x128xf32, #tpu.memory_space<vmem>>, vector<1x128xf32>
    %4 = vector.broadcast %3 : vector<1x128xf32> to vector<8x128xf32>
    %5 = arith.addf %2, %4 : vector<8x128xf32>
    %cst_4 = arith.constant 0.000000e+00 : f32
    %6 = vector.broadcast %cst_4 : f32 to vector<8x128xf32>
    %7 = arith.maximumf %5, %6 : vector<8x128xf32>
    %c24 = arith.constant 24 : index
    %c0_5 = arith.constant 0 : index
    %8 = vector.load %arg3[%c24, %c0_5] : memref<360x128xf32, #tpu.memory_space<vmem>>, vector<128x128xf32>
    %cst_6 = arith.constant dense<0.000000e+00> : vector<8x128xf32>
    %9 = tpu.matmul %7, %8, %cst_6 {dimension_numbers = #tpu.dot_dimension_numbers<[1], [0], [0], [1], [0, 0, 1, 1], [], []>} : vector<8x128xf32>, vector<128x128xf32>, vector<8x128xf32> -> vector<8x128xf32>
    %c152 = arith.constant 152 : index
    %c0_7 = arith.constant 0 : index
    %10 = vector.load %arg3[%c152, %c0_7] : memref<360x128xf32, #tpu.memory_space<vmem>>, vector<1x128xf32>
    %11 = vector.broadcast %10 : vector<1x128xf32> to vector<8x128xf32>
    %12 = arith.addf %9, %11 : vector<8x128xf32>
    %cst_8 = arith.constant 0.000000e+00 : f32
    %13 = vector.broadcast %cst_8 : f32 to vector<8x128xf32>
    %14 = arith.maximumf %12, %13 : vector<8x128xf32>
    %c0_9 = arith.constant 0 : index
    %c0_10 = arith.constant 0 : index
    %15 = vector.load %arg2[%c0_9, %c0_10] : memref<8x256xbf16, #tpu.memory_space<vmem>>, vector<8x256xbf16>
    %c0_11 = arith.constant 0 : index
    %c0_12 = arith.constant 0 : index
    %16 = vector.load %arg4[%c0_11, %c0_12] : memref<256x64xbf16, #tpu.memory_space<vmem>>, vector<256x64xbf16>
    %cst_13 = arith.constant dense<0.000000e+00> : vector<8x64xf32>
    %17 = tpu.matmul %15, %16, %cst_13 {dimension_numbers = #tpu.dot_dimension_numbers<[1], [0], [0], [1], [0, 0, 1, 1], [], []>} : vector<8x256xbf16>, vector<256x64xbf16>, vector<8x64xf32> -> vector<8x64xf32>
    %c160 = arith.constant 160 : index
    %c0_14 = arith.constant 0 : index
    %18 = vector.load %arg3[%c160, %c0_14] : memref<360x128xf32, #tpu.memory_space<vmem>>, vector<128x128xf32>
    %cst_15 = arith.constant dense<0.000000e+00> : vector<8x128xf32>
    %19 = tpu.matmul %14, %18, %cst_15 {dimension_numbers = #tpu.dot_dimension_numbers<[1], [0], [0], [1], [0, 0, 1, 1], [], []>} : vector<8x128xf32>, vector<128x128xf32>, vector<8x128xf32> -> vector<8x128xf32>
    %c288 = arith.constant 288 : index
    %c0_16 = arith.constant 0 : index
    %20 = vector.load %arg3[%c288, %c0_16] : memref<360x128xf32, #tpu.memory_space<vmem>>, vector<64x128xf32>
    %cst_17 = arith.constant dense<0.000000e+00> : vector<8x128xf32>
    %21 = tpu.matmul %17, %20, %cst_17 {dimension_numbers = #tpu.dot_dimension_numbers<[1], [0], [0], [1], [0, 0, 1, 1], [], []>} : vector<8x64xf32>, vector<64x128xf32>, vector<8x128xf32> -> vector<8x128xf32>
    %22 = arith.addf %19, %21 : vector<8x128xf32>
    %c352 = arith.constant 352 : index
    %c0_18 = arith.constant 0 : index
    %23 = vector.load %arg3[%c352, %c0_18] : memref<360x128xf32, #tpu.memory_space<vmem>>, vector<1x128xf32>
    %24 = vector.broadcast %23 : vector<1x128xf32> to vector<8x128xf32>
    %25 = arith.addf %22, %24 : vector<8x128xf32>
    %c0_19 = arith.constant 0 : index
    %c0_20 = arith.constant 0 : index
    %26 = vector.load %arg5[%c0_19, %c0_20] : memref<8x128xf32, #tpu.memory_space<vmem>>, vector<8x128xf32>
    tpu.vector_store %arg5[%c0_19, %c0_20], %25 {strides = array<i32>} : memref<8x128xf32, #tpu.memory_space<vmem>>, vector<8x128xf32>,
    return
  }
  func.func @transform_0(%arg0: i32) -> (i32, i32) {
    %c0_i32 = arith.constant 0 : i32
    %c0_i32_0 = arith.constant 0 : i32
    return %arg0, %c0_i32 : i32, i32
  }
  func.func @transform_1(%arg0: i32) -> (i32, i32) {
    %c0_i32 = arith.constant 0 : i32
    %c0_i32_0 = arith.constant 0 : i32
    return %arg0, %c0_i32 : i32, i32
  }
  func.func @transform_2(%arg0: i32) -> (i32, i32) {
    %c0_i32 = arith.constant 0 : i32
    %c0_i32_0 = arith.constant 0 : i32
    %c0_i32_1 = arith.constant 0 : i32
    return %c0_i32, %c0_i32_0 : i32, i32
  }
  func.func @transform_3(%arg0: i32) -> (i32, i32) {
    %c0_i32 = arith.constant 0 : i32
    %c0_i32_0 = arith.constant 0 : i32
    %c0_i32_1 = arith.constant 0 : i32
    return %c0_i32, %c0_i32_0 : i32, i32
  }
  func.func @transform_4(%arg0: i32) -> (i32, i32) {
    %c0_i32 = arith.constant 0 : i32
    %c0_i32_0 = arith.constant 0 : i32
    return %arg0, %c0_i32 : i32, i32
  }
}

</mosaic_0001>

<bundles_post_ra>
// kernel: tpu_custom_call.1
= control target key start
LH: loop header
LB: loop body
LE: loop exit
PB: predicated region body
PF: predicated region fallthrough
CT: control target
= control target key end

     0   :  { %9 = vsyncpa [#allocation3], 0  ;;  %s1036_s0 = inlined_call_operand.vmem [shape: f32[8,16], index: 0, kind: input, shape index: {}]   ;;  %s1037_s1 = inlined_call_operand.vmem [shape: bf16[8,256], index: 1, kind: input, shape index: {}]   ;;  %s1038_s2 = inlined_call_operand.hbm [shape: f32[360,128], index: 2, kind: input, shape index: {}]   ;;  %s1039_s3 = inlined_call_operand.vmem [shape: bf16[256,64], index: 3, kind: input, shape index: {}]   ;;  %s1040_s4 = inlined_call_operand.hbm [shape: f32[8,128], index: 4, kind: output, shape index: {}]  }
   0x1   :  { %10 = vsyncpa [#allocation4], 0  ;;  %s897_s15 = smov [#allocation2]   ;;  %s849_s19 = scalar_lea.hbm %s1038_s2, 5760 }
   0x2   :  { %s20_s16 = sshll.u32 %s897_s15, 4  ;;  %p850_p0 = scmp.ne.s32.totalorder %s1038_s2, %s849_s19  ;;  %s21_s16 = int_to_ptr.vmem [resolvable:$true] %s20_s16 }
   0x3   :  { %p853_p1 = scmp.lt.u32.totalorder %s849_s19, %s1038_s2 }
   0x5   :  { %p855_p2 = pnand %p853_p1, %p850_p0 }
   0x7   :  { %858 = shalt.err (!%p855_p2)
}
   0x8   :  { %s859_s24 = scalar_lea.vmem %s21_s16, 5760  ;;  %p864_p4 = scmp.lt.s32.totalorder %s21_s16, %s21_s16 }
   0x9   :  { %p860_p3 = scmp.ne.s32.totalorder %s21_s16, %s859_s24  ;;  %p865_p5 = scmp.lt.s32.totalorder %s859_s24, %s859_s24 }
   0xb   :  { %p866_p6 = por %p865_p5, %p864_p4 }
   0xd   :  { %p867_p7 = pnand %p866_p6, %p860_p3 }
   0xf   :  { %870 = shalt.err (!%p867_p7)
}
  0x10   :  { %s898_s25 = smov 128   ;;  %s899_s26 = smov 8  }
  0x11   :  { %26 = dma.hbm_to_vmem [thread:$0]  %s1038_s2, 5760, %s21_s16, [#allocation3], %s898_s25, %s898_s25, %s899_s26  }
  0x12   :  { %893 = dma.done.wait [#allocation3], 5760  }
  0x13   :  { %894 = vsyncadd [#allocation3], 4294961536  ;;  %v900_v0 = vmov 0.0|0.0   ;;  %vm901_vm0 = vmmov 0   ;;  %v902_v1 = vmov 0.0   ;;  %v34_v2 = vld [vmem:[#allocation2] sm:$0xff] }
  0x14   :  { %761 = vmatprep.subr.bf16.mxu1 %v900_v0  ;;  %669 = vmatprep.mubr.msk.f32.mxu1 %vm901_vm0, %v902_v1  ;;  %v35_v3 = vld [vmem:[#allocation2 + $0x8] sm:$0xff]  ;;  %v33_v5 = vld [vmem:[%s1036_s0] sm:$0xff]  ;;  %vm41_vm1 = vcmask 130048   ;;  %v116_v8 = vld [vmem:[#allocation2 + $0x18] sm:$0xff]  ;;  %vm408_vm2 = vcmask 523264  }
  0x15   :  { %v762_v4 = vpack.c.bf16 %v35_v3, %v34_v2  ;;  %v831_v6 = vld [vmem:[%s1039_s3 + $0x40] sm:$0xff]   ;;  %v833_v11 = vld [vmem:[%s1039_s3 + $0x48] sm:$0xff]   ;;  %v119_v14 = vld [vmem:[#allocation2 + $0x30] sm:$0xff] }
  0x16   :  { %v832_v7 = vld [vmem:[%s1039_s3] sm:$0xff]   ;;  %617 = vmatprep.subr.bf16.mxu0 %v831_v6  ;;  %v834_v12 = vld [vmem:[%s1039_s3 + $0x8] sm:$0xff]   ;;  %v835_v16 = vld [vmem:[%s1039_s3 + $0x50] sm:$0xff]  }
  0x17   :  { %763 = vmatpush3.bf16.msra.mxu1 %v762_v4  ;;  %v117_v9 = vld [vmem:[#allocation2 + $0x20] sm:$0xff]  ;;  %618 = vmatpush3.bf16.msra.mxu0 %v832_v7  ;;  %v118_v13 = vld [vmem:[#allocation2 + $0x28] sm:$0xff]  ;;  %v836_v17 = vld [vmem:[%s1039_s3 + $0x10] sm:$0xff]  }
  0x18   :  { %764 = vmatprep.subr.bf16.mxu1 %v900_v0  ;;  %v765_v10 = vpack.c.bf16 %v117_v9, %v116_v8  ;;  %619 = vmatprep.subr.bf16.mxu0 %v833_v11  ;;  %v768_v15 = vpack.c.bf16 %v119_v14, %v118_v13  ;;  %v120_v18 = vld [vmem:[#allocation2 + $0x38] sm:$0xff]  ;;  %v121_v19 = vld [vmem:[#allocation2 + $0x40] sm:$0xff]  ;;  %v122_v23 = vld [vmem:[#allocation2 + $0x48] sm:$0xff] }
  0x19   :  { %v837_v20 = vld [vmem:[%s1039_s3 + $0x58] sm:$0xff]   ;;  %v771_v21 = vpack.c.bf16 %v121_v19, %v120_v18  ;;  %v123_v24 = vld [vmem:[#allocation2 + $0x50] sm:$0xff]  ;;  %v839_v25 = vld [vmem:[%s1039_s3 + $0x60] sm:$0xff]  }
  0x1a   :  { %670 = vmatmul.mubr.msk.f32.vlgmr.msra.gmra.mrb[0].mxu1 %vm41_vm1, %v33_v5  ;;  %v838_v22 = vld [vmem:[%s1039_s3 + $0x18] sm:$0xff]   ;;  %v774_v26 = vpack.c.bf16 %v123_v24, %v122_v23  ;;  %v840_v27 = vld [vmem:[%s1039_s3 + $0x20] sm:$0xff]   ;;  %v841_v30 = vld [vmem:[%s1039_s3 + $0x68] sm:$0xff]  }
  0x1b   :  { %766 = vmatpush3.bf16.msra.mxu1 %v765_v10  ;;  %704 = vmatprep.mubr.msk.f32.mxu1 %vm901_vm0, %v902_v1  ;;  %v124_v28 = vld [vmem:[#allocation2 + $0x58] sm:$0xff]  ;;  %v125_v29 = vld [vmem:[#allocation2 + $0x60] sm:$0xff]  ;;  %v842_v32 = vld [vmem:[%s1039_s3 + $0x28] sm:$0xff]  }
  0x1c   :  { %620 = vmatpush3.bf16.msra.mxu0 %v834_v12  ;;  %767 = vmatprep.subr.bf16.mxu1 %v900_v0  ;;  %v777_v31 = vpack.c.bf16 %v125_v29, %v124_v28  ;;  %v126_v33 = vld [vmem:[#allocation2 + $0x68] sm:$0xff]  ;;  %v127_v34 = vld [vmem:[#allocation2 + $0x70] sm:$0xff]  ;;  %v128_v38 = vld [vmem:[#allocation2 + $0x78] sm:$0xff] }
  0x1d   :  { %621 = vmatprep.subr.bf16.mxu0 %v835_v16  ;;  %v843_v35 = vld [vmem:[%s1039_s3 + $0x70] sm:$0xff]   ;;  %v780_v36 = vpack.c.bf16 %v127_v34, %v126_v33  ;;  %v129_v39 = vld [vmem:[#allocation2 + $0x80] sm:$0xff]  ;;  %v845_v40 = vld [vmem:[%s1039_s3 + $0x78] sm:$0xff]  }
  0x1e   :  { %v844_v37 = vld [vmem:[%s1039_s3 + $0x30] sm:$0xff]   ;;  %v783_v41 = vpack.c.bf16 %v129_v39, %v128_v38  ;;  %v846_v42 = vld [vmem:[%s1039_s3 + $0x38] sm:$0xff]   ;;  %v130_v43 = vld [vmem:[#allocation2 + $0x88] sm:$0xff] }
  0x1f   :  { %769 = vmatpush3.bf16.msra.mxu1 %v768_v15  ;;  %v131_v44 = vld [vmem:[#allocation2 + $0x90] sm:$0xff]  ;;  %v208_v45 = vld [vmem:[%s1037_s1] sm:$0xff]  ;;  %v385_v50 = vld [vmem:[#allocation2 + $0xa8] sm:$0xff]  ;;  %s903_s1 = smov [#allocation5]  }
  0x20   :  { %622 = vmatpush3.bf16.msra.mxu0 %v836_v17  ;;  %770 = vmatprep.subr.bf16.mxu1 %v900_v0  ;;  %v786_v46 = vpack.c.bf16 %v131_v44, %v130_v43  ;;  %v578_v47 = vcombine.high %v208_v45, %v208_v45  ;;  %v577_v48 = vcombine.low %v208_v45, %v208_v45  ;;  %v384_v49 = vld [vmem:[#allocation2 + $0xa0] sm:$0xff]  ;;  %v386_v51 = vld [vmem:[#allocation2 + $0xb0] sm:$0xff]  ;;  %v387_v53 = vld [vmem:[#allocation2 + $0xb8] sm:$0xff]  ;;  %s565_s3 = sshll.u32 %s903_s1, 4  ;;  %s566_s3 = int_to_ptr.vmem [resolvable:$true] %s565_s3 }
  0x21   :  { %623 = vmatprep.subr.bf16.mxu0 %v837_v20  ;;  %v801_v52 = vpack.c.bf16 %v385_v50, %v384_v49  ;;  %v804_v54 = vpack.c.bf16 %v387_v53, %v386_v51  ;;  %v388_v55 = vld [vmem:[#allocation2 + $0xc0] sm:$0xff]  ;;  %v389_v56 = vld [vmem:[#allocation2 + $0xc8] sm:$0xff]  ;;  %v390_v58 = vld [vmem:[#allocation2 + $0xd0] sm:$0xff]  ;;  %s871_s0 = scalar_lea.vmem %s566_s3, 128  ;;  %p876_p9 = scmp.lt.s32.totalorder %s566_s3, %s566_s3 }
  0x22   :  { %376 = vmatprep.mubr.bf16.mxu0 %v578_v47  ;;  %v807_v57 = vpack.c.bf16 %v389_v56, %v388_v55  ;;  %v391_v59 = vld [vmem:[#allocation2 + $0xd8] sm:$0xff]  ;;  %v392_v61 = vld [vmem:[#allocation2 + $0xe0] sm:$0xff]  ;;  %v393_v62 = vld [vmem:[#allocation2 + $0xe8] sm:$0xff]  ;;  %p872_p8 = scmp.ne.s32.totalorder %s566_s3, %s871_s0  ;;  %p877_p10 = scmp.lt.s32.totalorder %s871_s0, %s871_s0 }
  0x23   :  { %772 = vmatpush3.bf16.msra.mxu1 %v771_v21  ;;  %v810_v60 = vpack.c.bf16 %v391_v59, %v390_v58  ;;  %v813_v63 = vpack.c.bf16 %v393_v62, %v392_v61  ;;  %v394_v2 = vld [vmem:[#allocation2 + $0xf0] sm:$0xff]  ;;  %v395_v3 = vld [vmem:[#allocation2 + $0xf8] sm:$0xff]  ;;  %v396_v5 = vld [vmem:[#allocation2 + $0x100] sm:$0xff] }
  0x24   :  { %624 = vmatpush3.bf16.msra.mxu0 %v838_v22  ;;  %773 = vmatprep.subr.bf16.mxu1 %v900_v0  ;;  %v816_v4 = vpack.c.bf16 %v395_v3, %v394_v2  ;;  %v397_v6 = vld [vmem:[#allocation2 + $0x108] sm:$0xff]  ;;  %v574_v8 = vld [vmem:[#allocation2 + $0x10] ss:$0 sm:$0xff]  ;;  %v400_v9 = vld [vmem:[#allocation2 + $0x120] sm:$0xff]  ;;  %p878_p11 = por %p877_p10, %p876_p9 }
  0x25   :  { %625 = vmatprep.subr.bf16.mxu0 %v839_v25  ;;  %v819_v7 = vpack.c.bf16 %v397_v6, %v396_v5  ;;  %v401_v10 = vld [vmem:[#allocation2 + $0x128] sm:$0xff]  ;;  %v402_v16 = vld [vmem:[#allocation2 + $0x130] sm:$0xff]  ;;  %v403_v17 = vld [vmem:[#allocation2 + $0x138] sm:$0xff] }
  0x26   :  { %v789_v14 = vpack.c.bf16 %v401_v10, %v400_v9  ;;  %v792_v18 = vpack.c.bf16 %v403_v17, %v402_v16  ;;  %v404_v19 = vld [vmem:[#allocation2 + $0x140] sm:$0xff]  ;;  %v405_v20 = vld [vmem:[#allocation2 + $0x148] sm:$0xff]  ;;  %v406_v22 = vld [vmem:[#allocation2 + $0x150] sm:$0xff]  ;;  %p879_p12 = pnand %p878_p11, %p872_p8 }
  0x27   :  { %775 = vmatpush3.bf16.msra.mxu1 %v774_v26  ;;  %v795_v21 = vpack.c.bf16 %v405_v20, %v404_v19  ;;  %v407_v23 = vld [vmem:[#allocation2 + $0x158] sm:$0xff]  ;;  %v596_v39 = vld [vmem:[#allocation2 + $0x160] ss:$0 sm:$0xff] }
  0x28   :  { %626 = vmatpush3.bf16.msra.mxu0 %v840_v27  ;;  %776 = vmatprep.subr.bf16.mxu1 %v900_v0  ;;  %v798_v25 = vpack.c.bf16 %v407_v23, %v406_v22  ;;  %v398_v27 = vld [vmem:[#allocation2 + $0x110] sm:$0xff]  ;;  %v399_v28 = vld [vmem:[#allocation2 + $0x118] sm:$0xff] }
  0x29   :  { %627 = vmatprep.subr.bf16.mxu0 %v841_v30  ;;  %v822_v30 = vpack.c.bf16 %v399_v28, %v398_v27 }
  0x2b   :  { %778 = vmatpush3.bf16.msra.mxu1 %v777_v31 }
  0x2c   :  { %628 = vmatpush3.bf16.msra.mxu0 %v842_v32  ;;  %779 = vmatprep.subr.bf16.mxu1 %v900_v0  ;;  %v576_v32 = vld [vmem:[#allocation2 + $0x98] ss:$0 sm:$0xff] }
  0x2d   :  { %629 = vmatprep.subr.bf16.mxu0 %v843_v35 }
  0x2f   :  { %781 = vmatpush3.bf16.msra.mxu1 %v780_v36 }
  0x30   :  { %630 = vmatpush3.bf16.msra.mxu0 %v844_v37  ;;  %782 = vmatprep.subr.bf16.mxu1 %v900_v0 }
  0x31   :  { %631 = vmatprep.subr.bf16.mxu0 %v845_v40 }
  0x33   :  { %784 = vmatpush3.bf16.msra.mxu1 %v783_v41 }
  0x34   :  { %785 = vmatprep.subr.bf16.mxu1 %v900_v0  ;;  %632 = vmatpush3.bf16.msra.mxu0 %v846_v42 }
  0x35   :  { %800 = vmatprep.subr.bf16.mxu0 %v900_v0 }
  0x37   :  { %787 = vmatpush3.bf16.msra.mxu1 %v786_v46  ;;  %377 = vmatmul.mubr.bf16.vlgmr.msra.gmra.mrb[0].mxu0 %v577_v48 }
  0x38   :  { %788 = vmatprep.subr.bf16.mxu1 %v900_v0  ;;  %758 = vmatprep.mubr.msk.f32.mxu0 %vm901_vm0, %v902_v1 }
  0x39   :  { %802 = vmatpush3.bf16.msra.mxu0 %v801_v52 }
  0x3a   :  { %803 = vmatprep.subr.bf16.mxu0 %v900_v0 }
  0x3d   :  { %805 = vmatpush3.bf16.msra.mxu0 %v804_v54 }
  0x3e   :  { %806 = vmatprep.subr.bf16.mxu0 %v900_v0 }
  0x41   :  { %808 = vmatpush3.bf16.msra.mxu0 %v807_v57 }
  0x42   :  { %809 = vmatprep.subr.bf16.mxu0 %v900_v0 }
  0x45   :  { %811 = vmatpush3.bf16.msra.mxu0 %v810_v60 }
  0x46   :  { %812 = vmatprep.subr.bf16.mxu0 %v900_v0 }
  0x49   :  { %814 = vmatpush3.bf16.msra.mxu0 %v813_v63 }
  0x4a   :  { %815 = vmatprep.subr.bf16.mxu0 %v900_v0 }
  0x4d   :  { %817 = vmatpush3.bf16.msra.mxu0 %v816_v4 }
  0x4e   :  { %818 = vmatprep.subr.bf16.mxu0 %v900_v0 }
  0x51   :  { %820 = vmatpush3.bf16.msra.mxu0 %v819_v7 }
  0x52   :  { %821 = vmatprep.subr.bf16.mxu0 %v900_v0 }
  0x55   :  { %823 = vmatpush3.bf16.msra.mxu0 %v822_v30 }
  0xed   :  { %v111_v11 = vpop.f32.mrb[0].mxu1 }
  0xee   :  { %v112_v12 = vadd.f32 %v574_v8, %v111_v11  ;;  %v671_v13 = vpop.f32.mrb[1].mxu1 }
  0xf0   :  { %v115_v15 = vmax.f32 %v112_v12, 0.0 }
  0xf2   :  { %705 = vmatmul.mubr.f32.vlgmr.msra.gmra.mrb[2].mxu1 %v115_v15 }
  0xf3   :  { %790 = vmatpush3.bf16.msra.mxu1 %v789_v14  ;;  %723 = vmatprep.mubr.msk.f32.mxu1 %vm901_vm0, %v902_v1 }
  0xf4   :  { %791 = vmatprep.subr.bf16.mxu1 %v900_v0 }
  0xf7   :  { %793 = vmatpush3.bf16.msra.mxu1 %v792_v18 }
  0xf8   :  { %794 = vmatprep.subr.bf16.mxu1 %v900_v0 }
  0xfb   :  { %796 = vmatpush3.bf16.msra.mxu1 %v795_v21 }
  0xfc   :  { %797 = vmatprep.subr.bf16.mxu1 %v900_v0 }
  0xff   :  { %799 = vmatpush3.bf16.msra.mxu1 %v798_v25 }
 0x10a   :  { %v633_v24 = vpop.f32.mrb[0].mxu0 }
 0x10b   :  { %v634_v26 = vpop.f32.mrb[1].mxu0 }
 0x10c   :  { %v635_v29 = vadd.f32 %v634_v26, %v633_v24  ;;  %v636_v1 = vpop.f32.mrb[2].mxu0 }
 0x10d   :  { %v637_v31 = vpop.f32.mrb[3].mxu0 }
 0x10e   :  { %724 = vmatmul.mubr.msk.f32.vlgmr.msra.gmra.mrb[4].mxu1 %vm408_vm2, %v635_v29 }
 0x1c5   :  { %v203_v33 = vpop.f32.mrb[2].mxu1 }
 0x1c6   :  { %v204_v34 = vadd.f32 %v576_v32, %v203_v33  ;;  %v706_v35 = vpop.f32.mrb[3].mxu1 }
 0x1c8   :  { %v207_v0 = vmax.f32 %v204_v34, 0.0 }
 0x1ca   :  { %759 = vmatmul.mubr.f32.vlgmr.msra.gmra.mrb[4].mxu0 %v207_v0 }
 0x1e1   :  { %v478_v36 = vpop.f32.mrb[4].mxu1 }
 0x1e2   :  { %v725_v37 = vpop.f32.mrb[5].mxu1 }
 0x29d   :  { %v548_v38 = vpop.f32.mrb[4].mxu0 }
 0x29e   :  { %v549_v40 = vadd.f32 %v548_v38, %v478_v36  ;;  %v760_v41 = vpop.f32.mrb[5].mxu0 }
 0x2a0   :  { %v557_v42 = vadd.f32 %v596_v39, %v549_v40 }
 0x2a2   :  { %558 = vst [vmem:[#allocation5] sm:$0xff] %v557_v42 }
 0x2a3   :  { %882 = shalt.err (!%p879_p12)
}
 0x2a4   :  { %s883_s12 = scalar_lea.hbm %s1040_s4, 128 }
 0x2a5   :  { %p884_p13 = scmp.ne.s32.totalorder %s1040_s4, %s883_s12  ;;  %p887_p0 = scmp.lt.u32.totalorder %s883_s12, %s1040_s4 }
 0x2a7   :  { %p889_p1 = pnand %p887_p0, %p884_p13 }
 0x2a9   :  { %892 = shalt.err (!%p889_p1)
}
 0x2aa   :  { %568 = dma.vmem_to_hbm [thread:$0]  %s566_s3, 128, %s1040_s4, [#allocation4]  }
 0x2ab   :  { %895 = dma.done.wait [#allocation4], 128  }
 0x2ac   :  { %896 = vsyncadd [#allocation4], 4294967168 }
 0x2ad   :  { %572 = vsyncpa [#allocation3], 1 }
 0x2ae   :  { %573 = vsyncpa [#allocation4], 1 }

</bundles_post_ra>
